<compile_context>
chip_gen: v7x
topology: tpu7x:2x2x1
jax: 0.10.0
libtpu: 0.0.40
codegen_flags: <defaults>
</compile_context>

<pallas_src>
import jax
import jax.numpy as jnp
from jax.experimental import pallas as pl
from jax.experimental.pallas import tpu as pltpu


_MAX_LANES = 4096                  # cap on the lane (last) dim of the slab
_X_BLOCK_BYTES = 4 * 1024 * 1024   # target x-block bytes per grid step


def _add_pos_kernel(x_ref, pos_ref, o_ref):
    # x_ref/o_ref: (TB, TS, C); pos_ref: (TS, C), broadcast over the batch dim.
    o_ref[...] = x_ref[...] + pos_ref[...][None, :, :]


def _choose_lanes(lp):
    """Largest multiple-of-128 divisor of lp (lp is a multiple of 128), capped."""
    c = min(_MAX_LANES, lp)
    c -= c % 128
    while c > 128 and lp % c:
        c -= 128
    return c


def _choose_tiles(b, s, c, itemsize):
    """Sublane-dense (TB, TS) under the per-step VMEM budget."""
    sub = max(8, 32 // itemsize)           # 8 (f32) / 16 (bf16) / 32 (int8) rows
    row_bytes = c * itemsize
    max_rows = max(1, _X_BLOCK_BYTES // row_bytes)
    if s <= max_rows:
        ts = s                              # full extent: always a legal block dim
        tb = max(1, min(b, max_rows // max(s, 1)))
    else:
        ts = min(s, max(sub, (max_rows // sub) * sub))   # multiple of sub -> unpadded
        tb = 1
    return tb, ts


@jax.jit
def positional_encoding(x, pos_embed):
    """x: (B, P, D); pos_embed: (1, P, D). Returns x + pos_embed (broadcast over B)."""
    B, P, D = x.shape
    assert pos_embed.shape == (1, P, D)

    # PyTorch-style dtype promotion (e.g. bf16 x + f32 pos -> f32 result).
    out_dtype = jnp.result_type(x.dtype, pos_embed.dtype)
    itemsize = jnp.dtype(out_dtype).itemsize

    L = P * D
    Lp = ((L + 127) // 128) * 128           # lane-pad flattened axis only if needed

    xf = x.astype(out_dtype).reshape(B, L)
    pf = pos_embed.astype(out_dtype).reshape(1, L)
    if Lp != L:
        xf = jnp.pad(xf, ((0, 0), (0, Lp - L)))
        pf = jnp.pad(pf, ((0, 0), (0, Lp - L)))

    C = _choose_lanes(Lp)
    S = Lp // C
    x3 = xf.reshape(B, S, C)                # lane/sublane-dense slab per batch row
    p2 = pf.reshape(S, C)

    TB, TS = _choose_tiles(B, S, C, itemsize)
    grid = (pl.cdiv(S, TS), pl.cdiv(B, TB))  # batch innermost: pos DMA is reused

    out3 = pl.pallas_call(
        _add_pos_kernel,
        out_shape=jax.ShapeDtypeStruct((B, S, C), out_dtype),
        grid_spec=pl.GridSpec(
            grid=grid,
            in_specs=[
                pl.BlockSpec((TB, TS, C), lambda s, b: (b, s, 0)),  # x tile
                pl.BlockSpec((TS, C), lambda s, b: (s, 0)),         # pos tile
            ],
            out_specs=pl.BlockSpec((TB, TS, C), lambda s, b: (b, s, 0)),
        ),
        compiler_params=pltpu.CompilerParams(
            dimension_semantics=("parallel", "parallel"),
            vmem_limit_bytes=40 * 1024 * 1024,
        ),
    )(x3, p2)

    out = out3.reshape(B, Lp)
    if Lp != L:
        out = out[:, :L]
    return out.reshape(B, P, D)


if __name__ == "__main__":
    # Small shapes consistent with the module: batch=2, num_patches=8, embed_dim=32.
    B, P, D = 2, 8, 32
    key = jax.random.PRNGKey(0)
    kx, kp = jax.random.split(key)

    x = jax.random.normal(kx, (B, P, D), dtype=jnp.float32)
    # The PyTorch module initializes pos_embed to zeros; use non-zero values so
    # the broadcast-add path is actually exercised and verified.
    pos_embed = 0.01 * jax.random.normal(kp, (1, P, D), dtype=jnp.float32)

    out = jax.block_until_ready(positional_encoding(x, pos_embed))

    ref = x + pos_embed  # broadcast reference
    assert out.shape == (B, P, D)
    assert out.dtype == ref.dtype
    assert jnp.allclose(out, ref, atol=1e-6, rtol=1e-6)
    print("KERNEL_OK")
</pallas_src>

<mosaic_0001>
module attributes {stable_mosaic.version = 11 : i64} {
  func.func @_add_pos_kernel(%arg0: i32, %arg1: i32, %arg2: memref<2x1x256xf32, #tpu.memory_space<vmem>>, %arg3: memref<1x256xf32, #tpu.memory_space<vmem>>, %arg4: memref<2x1x256xf32, #tpu.memory_space<vmem>>) attributes {dimension_semantics = [#tpu.dimension_semantics<parallel>, #tpu.dimension_semantics<parallel>], iteration_bounds = array<i64: 1, 1>, scalar_prefetch = 0 : i64, scratch_operands = 0 : i64, tpu.core_type = #tpu.core_type<tc>, window_params = [{transform_indices = @transform_0, window_bounds = array<i64: 2, 1, 256>}, {transform_indices = @transform_1, window_bounds = array<i64: 1, 256>}, {transform_indices = @transform_2, window_bounds = array<i64: 2, 1, 256>}]} {
    %c0 = arith.constant 0 : index
    %c0_0 = arith.constant 0 : index
    %c0_1 = arith.constant 0 : index
    %0 = vector.load %arg2[%c0, %c0_0, %c0_1] : memref<2x1x256xf32, #tpu.memory_space<vmem>>, vector<2x1x256xf32>
    %c0_2 = arith.constant 0 : index
    %c0_3 = arith.constant 0 : index
    %1 = vector.load %arg3[%c0_2, %c0_3] : memref<1x256xf32, #tpu.memory_space<vmem>>, vector<1x256xf32>
    %2 = vector.shape_cast %1 : vector<1x256xf32> to vector<1x1x256xf32>
    %3 = vector.broadcast %2 : vector<1x1x256xf32> to vector<2x1x256xf32>
    %4 = arith.addf %0, %3 : vector<2x1x256xf32>
    %c0_4 = arith.constant 0 : index
    %c0_5 = arith.constant 0 : index
    %c0_6 = arith.constant 0 : index
    %5 = vector.load %arg4[%c0_4, %c0_5, %c0_6] : memref<2x1x256xf32, #tpu.memory_space<vmem>>, vector<2x1x256xf32>
    tpu.vector_store %arg4[%c0_4, %c0_5, %c0_6], %4 {strides = array<i32>} : memref<2x1x256xf32, #tpu.memory_space<vmem>>, vector<2x1x256xf32>,
    return
  }
  func.func @transform_0(%arg0: i32, %arg1: i32) -> (i32, i32, i32) {
    %c0_i32 = arith.constant 0 : i32
    %c0_i32_0 = arith.constant 0 : i32
    return %arg1, %arg0, %c0_i32 : i32, i32, i32
  }
  func.func @transform_1(%arg0: i32, %arg1: i32) -> (i32, i32) {
    %c0_i32 = arith.constant 0 : i32
    %c0_i32_0 = arith.constant 0 : i32
    return %arg0, %c0_i32 : i32, i32
  }
  func.func @transform_2(%arg0: i32, %arg1: i32) -> (i32, i32, i32) {
    %c0_i32 = arith.constant 0 : i32
    %c0_i32_0 = arith.constant 0 : i32
    return %arg1, %arg0, %c0_i32 : i32, i32, i32
  }
}

</mosaic_0001>

<bundles_post_ra>
// kernel: positional_encoding.1
= control target key start
LH: loop header
LB: loop body
LE: loop exit
PB: predicated region body
PF: predicated region fallthrough
CT: control target
= control target key end

     0   :  { %v16_v0 = vlaneseq  ;;  %s56_s0 = inlined_call_operand.vmem [shape: f32[2,1,256], index: 0, kind: input, shape index: {}]   ;;  %s57_s1 = inlined_call_operand.vmem [shape: f32[1,256], index: 1, kind: input, shape index: {}]   ;;  %s58_s2 = inlined_call_operand.vmem [shape: f32[2,1,256], index: 2, kind: output, shape index: {}]  }
   0x1   :  { %v11_v1 = vld [vmem:[%s56_s0] sm:$0x3]  ;;  %v12_v3 = vld [vmem:[%s56_s0 + $0x2] sm:$0x3] }
   0x2   :  { %v13_v2 = vld [vmem:[%s57_s1] sm:$0x3]  ;;  %vm18_vm0 = vcmp.lt.s32.totalorder %v16_v0, 256 }
   0x3   :  { %v14_v4 = vadd.f32 %v13_v2, %v11_v1  ;;  %v15_v5 = vadd.f32 %v13_v2, %v12_v3 }
   0x5   :  { %20 = vst.msk [vmem:[%s58_s2] sm:$0x3] %vm18_vm0, %v14_v4  ;;  %21 = vst.msk [vmem:[%s58_s2 + $0x2] sm:$0x3] %vm18_vm0, %v15_v5 }

</bundles_post_ra>
